<compile_context>
chip_gen: v7x
topology: tpu7x:2x2x1
jax: 0.10.0
libtpu: 0.0.40
codegen_flags: <defaults>
</compile_context>

<pallas_src>
import jax
import jax.numpy as jnp
from jax.experimental import pallas as pl
from jax.experimental.pallas import tpu as pltpu

BN_EPS = 1e-5

# Per-grid-step VMEM pipeline budget (double-buffered in/out blocks + weight
# + f32 accumulator).  Conservative for every generation (v7x: 64 MiB
# physical; v5e/v6e: 128 MiB physical, 16/32 MiB default scoped limit).
_VMEM_BUDGET = 24 << 20
_VMEM_SILENT = 12 << 20      # below this, leave the default scoped limit alone
_VMEM_LIMIT_CAP = 60 << 20   # never request more than v7x physical VMEM


def _round_down(a, b):
    return (a // b) * b


def _compiler_params(semantics, footprint_bytes):
    kwargs = dict(dimension_semantics=semantics)
    if footprint_bytes > _VMEM_SILENT:
        kwargs["vmem_limit_bytes"] = min(
            int(footprint_bytes * 1.5) + (4 << 20), _VMEM_LIMIT_CAP)
    return pltpu.CompilerParams(**kwargs)


# ----------------------------- Pallas kernels ------------------------------

def _bn_relu_kernel(x_ref, scale_ref, bias_ref, o_ref):
    # x: (TR, TC); rows are (n, c) pairs, cols are spatial positions.
    # scale/bias: (TR, 1) f32.  Affine in f32, store in the activation dtype.
    y = x_ref[...].astype(jnp.float32) * scale_ref[...] + bias_ref[...]
    o_ref[...] = jnp.maximum(y, 0.0).astype(o_ref.dtype)


def _bn_relu_conv_kernel(x_ref, scale_ref, bias_ref, w_ref, o_ref, acc_ref):
    # x: (TB, TK, THW), scale/bias: (TK, 1) f32, w: (TCOUT, TK),
    # o/acc: (TB, TCOUT, THW).  Grid = (batch, cout, spatial, k); k innermost.
    k = pl.program_id(3)

    @pl.when(k == 0)
    def _():
        acc_ref[...] = jnp.zeros_like(acc_ref)

    w = w_ref[...]
    scale = scale_ref[...]
    bias = bias_ref[...]
    for b in range(x_ref.shape[0]):          # static unroll over batch tile
        y = jnp.maximum(x_ref[b].astype(jnp.float32) * scale + bias, 0.0)
        acc_ref[b] += jnp.dot(w, y.astype(w.dtype),
                              preferred_element_type=jnp.float32)

    @pl.when(k == pl.num_programs(3) - 1)
    def _():
        o_ref[...] = acc_ref[...].astype(o_ref.dtype)


# --------------------------- branch implementations -------------------------

def _bn_relu(x, scale, bias, N, C, H, W):
    """disable_conv branch: elementwise affine + relu, NCHW kept."""
    rows, cols = N * C, H * W
    dt = x.dtype
    ib = jnp.dtype(dt).itemsize

    tr = rows if rows < 8 else min(256, _round_down(rows, 8))
    tc = cols if cols < 128 else min(2048, _round_down(cols, 128))

    def fp(tr_, tc_):
        return 2 * tr_ * tc_ * 2 * ib + 4 * tr_ * 4

    while tc > 128 and fp(tr, tc) > _VMEM_BUDGET:
        tc -= 128

    # v7x megacore: keep >= 2 parallel grid steps when the data allows it.
    if pl.cdiv(rows, tr) * pl.cdiv(cols, tc) < 2:
        if cols >= 256 and tc >= 256:
            tc = _round_down(tc // 2, 128)
        elif rows >= 16 and tr >= 16:
            tr = _round_down(tr // 2, 8)

    x2d = x.reshape(rows, cols)                       # contiguous, no copy
    s_rows = jnp.tile(scale, N).reshape(rows, 1)      # tiny (N*C elements)
    b_rows = jnp.tile(bias, N).reshape(rows, 1)

    out = pl.pallas_call(
        _bn_relu_kernel,
        out_shape=jax.ShapeDtypeStruct((rows, cols), dt),
        grid=(pl.cdiv(rows, tr), pl.cdiv(cols, tc)),
        in_specs=[
            pl.BlockSpec((tr, tc), lambda i, j: (i, j)),
            pl.BlockSpec((tr, 1), lambda i, j: (i, 0)),
            pl.BlockSpec((tr, 1), lambda i, j: (i, 0)),
        ],
        out_specs=pl.BlockSpec((tr, tc), lambda i, j: (i, j)),
        compiler_params=_compiler_params(("parallel", "parallel"),
                                         fp(tr, tc)),
        cost_estimate=pl.CostEstimate(
            flops=2 * rows * cols, transcendentals=0,
            bytes_accessed=2 * rows * cols * ib),
    )(x2d, s_rows, b_rows)
    return out.reshape(N, C, H, W)


def _bn_relu_conv(x, scale, bias, w, N, Cin, Cout, H, W):
    """conv branch: 1x1 conv == (Cout, Cin) @ relu(affine(x)) per batch elem."""
    HW = H * W
    dt = x.dtype
    ib = jnp.dtype(dt).itemsize

    # K (reduction) tile: when Cin is tiled it must divide Cin exactly and be
    # a multiple of 128 (weight lane dim); otherwise keep the full Cin.
    if Cin > 512 and Cin % 256 == 0:
        tk = 256
    elif Cin > 512 and Cin % 128 == 0:
        tk = 128
    else:
        tk = Cin
    # Cout tile: not a reduction axis, a partial last block is masked safely.
    tcout = Cout if Cout <= 512 else 256
    # Spatial tile.
    thw = HW if HW < 128 else min(2048, _round_down(HW, 128))

    def fp(tb_, thw_):
        return (2 * tb_ * tk * thw_ * ib          # x blocks (double-buffered)
                + 2 * tb_ * tcout * thw_ * ib     # out blocks
                + 2 * tcout * tk * ib             # weight
                + 4 * tk * 4                      # scale + bias
                + tb_ * tcout * thw_ * 4)         # f32 accumulator scratch

    while thw > 128 and fp(1, thw) > _VMEM_BUDGET:
        thw -= 128

    # Small-layer path: contract several batch images per grid step against
    # the resident weight to amortize the ~0.35 us per-step grid overhead.
    tb = 1
    for cand in range(min(N, 8), 0, -1):
        if N % cand == 0 and fp(cand, thw) <= _VMEM_BUDGET:
            tb = cand
            break

    # v7x megacore: keep >= 2 parallel grid steps when the data allows it.
    par_steps = pl.cdiv(N, tb) * pl.cdiv(Cout, tcout) * pl.cdiv(HW, thw)
    if par_steps < 2:
        if HW >= 256 and thw >= 256:
            thw = _round_down(thw // 2, 128)
        elif tb > 1:
            for cand in range(tb - 1, 0, -1):     # largest smaller divisor of N
                if N % cand == 0:
                    tb = cand
                    break

    x3d = x.reshape(N, Cin, HW)                   # contiguous, no copy
    s_col = scale.reshape(Cin, 1)
    b_col = bias.reshape(Cin, 1)
    w = w.astype(dt)    # bf16 weights for bf16 activations -> bf16 MXU passes

    out = pl.pallas_call(
        _bn_relu_conv_kernel,
        out_shape=jax.ShapeDtypeStruct((N, Cout, HW), dt),
        grid=(pl.cdiv(N, tb), pl.cdiv(Cout, tcout), pl.cdiv(HW, thw),
              pl.cdiv(Cin, tk)),
        in_specs=[
            pl.BlockSpec((tb, tk, thw), lambda b, o, j, k: (b, k, j)),
            pl.BlockSpec((tk, 1), lambda b, o, j, k: (k, 0)),
            pl.BlockSpec((tk, 1), lambda b, o, j, k: (k, 0)),
            pl.BlockSpec((tcout, tk), lambda b, o, j, k: (o, k)),
        ],
        out_specs=pl.BlockSpec((tb, tcout, thw), lambda b, o, j, k: (b, o, j)),
        scratch_shapes=[pltpu.VMEM((tb, tcout, thw), jnp.float32)],
        compiler_params=_compiler_params(
            ("parallel", "parallel", "parallel", "arbitrary"), fp(tb, thw)),
        cost_estimate=pl.CostEstimate(
            flops=2 * N * HW * Cin * Cout, transcendentals=0,
            bytes_accessed=ib * (N * HW * (Cin + Cout) + Cin * Cout)),
    )(x3d, s_col, b_col, w)
    return out.reshape(N, Cout, H, W)


# ------------------------------ Python wrapper ------------------------------

def init_bottleneck_params(key, in_planes, out_planes):
    """Deterministic parameter init (shapes match the nn.Module __init__)."""
    k_g, k_b, k_m, k_v, k_w = jax.random.split(key, 5)
    params = {
        "gamma": jax.random.normal(k_g, (in_planes,), jnp.float32) * 0.1 + 1.0,
        "beta": jax.random.normal(k_b, (in_planes,), jnp.float32) * 0.1,
        "running_mean": jax.random.normal(k_m, (in_planes,), jnp.float32) * 0.1,
        "running_var": jax.nn.softplus(
            jax.random.normal(k_v, (in_planes,), jnp.float32)
        ) + 0.5,
    }
    if in_planes != out_planes:
        # Conv2d(in, out, 1, bias=False) weight: (out, in, 1, 1)
        params["conv_w"] = jax.random.normal(
            k_w, (out_planes, in_planes, 1, 1), jnp.float32
        ) * (1.0 / jnp.sqrt(in_planes))
    return params


def bottleneck_block(x_nchw, params, in_planes, out_planes):
    N, C, H, W = x_nchw.shape
    assert C == in_planes

    # Fold BN (inference form) into per-channel scale / bias (tiny f32 op).
    scale = (params["gamma"].astype(jnp.float32) /
             jnp.sqrt(params["running_var"].astype(jnp.float32) + BN_EPS))
    bias = (params["beta"].astype(jnp.float32) -
            params["running_mean"].astype(jnp.float32) * scale)
    # TODO(synk): training-mode BatchNorm (batch statistics + running-stat
    # update) is not implemented; this is the eval/inference form.

    if in_planes == out_planes:
        return _bn_relu(x_nchw, scale, bias, N, C, H, W)

    w = params["conv_w"].reshape(out_planes, in_planes)
    return _bn_relu_conv(x_nchw, scale, bias, w, N, in_planes, out_planes, H, W)


# ------------------------------ reference & test -----------------------------

def _reference(x_nchw, params, in_planes, out_planes):
    scale = params["gamma"] / jnp.sqrt(params["running_var"] + BN_EPS)
    bias = params["beta"] - params["running_mean"] * scale
    y = x_nchw * scale[None, :, None, None] + bias[None, :, None, None]
    y = jnp.maximum(y, 0.0)
    if in_planes == out_planes:
        return y
    w = params["conv_w"].reshape(out_planes, in_planes)
    return jnp.einsum("nchw,oc->nohw", y, w)


if __name__ == "__main__":
    key = jax.random.PRNGKey(0)
    k_x, k_p1, k_p2 = jax.random.split(key, 3)

    N, H, W = 2, 16, 16
    in_planes, out_planes = 4, 8
    x = jax.random.normal(k_x, (N, in_planes, H, W), jnp.float32)

    # Conv branch (in_planes != out_planes)
    params = init_bottleneck_params(k_p1, in_planes, out_planes)
    out = bottleneck_block(x, params, in_planes, out_planes)
    out = jax.block_until_ready(out)
    ref = _reference(x, params, in_planes, out_planes)
    assert out.shape == (N, out_planes, H, W)
    assert jnp.allclose(out, ref, atol=1e-4, rtol=1e-4)

    # disable_conv branch (in_planes == out_planes)
    params_eq = init_bottleneck_params(k_p2, in_planes, in_planes)
    out_eq = bottleneck_block(x, params_eq, in_planes, in_planes)
    out_eq = jax.block_until_ready(out_eq)
    ref_eq = _reference(x, params_eq, in_planes, in_planes)
    assert out_eq.shape == (N, in_planes, H, W)
    assert jnp.allclose(out_eq, ref_eq, atol=1e-4, rtol=1e-4)

    print("KERNEL_OK")
</pallas_src>

<mosaic_0001>
module attributes {stable_mosaic.version = 11 : i64} {
  func.func @_bn_relu_conv_kernel(%arg0: i32, %arg1: i32, %arg2: i32, %arg3: i32, %arg4: memref<2x4x128xf32, #tpu.memory_space<vmem>>, %arg5: memref<4x1xf32, #tpu.memory_space<vmem>>, %arg6: memref<4x1xf32, #tpu.memory_space<vmem>>, %arg7: memref<8x4xf32, #tpu.memory_space<vmem>>, %arg8: memref<2x8x128xf32, #tpu.memory_space<vmem>>, %arg9: memref<2x8x128xf32, #tpu.memory_space<vmem>>) attributes {dimension_semantics = [#tpu.dimension_semantics<parallel>, #tpu.dimension_semantics<parallel>, #tpu.dimension_semantics<parallel>, #tpu.dimension_semantics<arbitrary>], iteration_bounds = array<i64: 1, 1, 2, 1>, scalar_prefetch = 0 : i64, scratch_operands = 1 : i64, tpu.core_type = #tpu.core_type<tc>, window_params = [{transform_indices = @transform_0, window_bounds = array<i64: 2, 4, 128>}, {transform_indices = @transform_1, window_bounds = array<i64: 4, 1>}, {transform_indices = @transform_2, window_bounds = array<i64: 4, 1>}, {transform_indices = @transform_3, window_bounds = array<i64: 8, 4>}, {transform_indices = @transform_4, window_bounds = array<i64: 2, 8, 128>}]} {
    %c0_i32 = arith.constant 0 : i32
    %0 = arith.cmpi eq, %arg3, %c0_i32 : i32
    %1 = arith.extui %0 : i1 to i32
    %c0_i32_0 = arith.constant 0 : i32
    %2 = arith.cmpi ne, %1, %c0_i32_0 : i32
    scf.if %2 {
      %cst_28 = arith.constant 0.000000e+00 : f32
      %39 = vector.broadcast %cst_28 : f32 to vector<2x8x128xf32>
      %c0_29 = arith.constant 0 : index
      %c0_30 = arith.constant 0 : index
      %c0_31 = arith.constant 0 : index
      %40 = vector.load %arg9[%c0_29, %c0_30, %c0_31] : memref<2x8x128xf32, #tpu.memory_space<vmem>>, vector<2x8x128xf32>
      tpu.vector_store %arg9[%c0_29, %c0_30, %c0_31], %39 {strides = array<i32>} : memref<2x8x128xf32, #tpu.memory_space<vmem>>, vector<2x8x128xf32>,
    } else {
    }
    %c0 = arith.constant 0 : index
    %c0_1 = arith.constant 0 : index
    %3 = vector.load %arg7[%c0, %c0_1] : memref<8x4xf32, #tpu.memory_space<vmem>>, vector<8x4xf32>
    %c0_2 = arith.constant 0 : index
    %c0_3 = arith.constant 0 : index
    %4 = vector.load %arg5[%c0_2, %c0_3] : memref<4x1xf32, #tpu.memory_space<vmem>>, vector<4x1xf32>
    %c0_4 = arith.constant 0 : index
    %c0_5 = arith.constant 0 : index
    %5 = vector.load %arg6[%c0_4, %c0_5] : memref<4x1xf32, #tpu.memory_space<vmem>>, vector<4x1xf32>
    %c0_6 = arith.constant 0 : index
    %c0_7 = arith.constant 0 : index
    %c0_8 = arith.constant 0 : index
    %6 = vector.load %arg4[%c0_6, %c0_7, %c0_8] : memref<2x4x128xf32, #tpu.memory_space<vmem>>, vector<1x4x128xf32>
    %7 = vector.shape_cast %6 : vector<1x4x128xf32> to vector<4x128xf32>
    %8 = vector.broadcast %4 : vector<4x1xf32> to vector<4x128xf32>
    %9 = arith.mulf %7, %8 : vector<4x128xf32>
    %10 = vector.broadcast %5 : vector<4x1xf32> to vector<4x128xf32>
    %11 = arith.addf %9, %10 : vector<4x128xf32>
    %cst = arith.constant 0.000000e+00 : f32
    %12 = vector.broadcast %cst : f32 to vector<4x128xf32>
    %13 = arith.maximumf %11, %12 : vector<4x128xf32>
    %c0_9 = arith.constant 0 : index
    %c0_10 = arith.constant 0 : index
    %c0_11 = arith.constant 0 : index
    %14 = vector.load %arg9[%c0_9, %c0_10, %c0_11] : memref<2x8x128xf32, #tpu.memory_space<vmem>>, vector<1x8x128xf32>
    %15 = vector.shape_cast %14 : vector<1x8x128xf32> to vector<8x128xf32>
    %cst_12 = arith.constant dense<0.000000e+00> : vector<8x128xf32>
    %16 = tpu.matmul %3, %13, %cst_12 {dimension_numbers = #tpu.dot_dimension_numbers<[1], [0], [0], [1], [0, 0, 1, 1], [], []>} : vector<8x4xf32>, vector<4x128xf32>, vector<8x128xf32> -> vector<8x128xf32>
    %17 = arith.addf %15, %16 : vector<8x128xf32>
    %c0_13 = arith.constant 0 : index
    %c0_14 = arith.constant 0 : index
    %c0_15 = arith.constant 0 : index
    %18 = vector.load %arg9[%c0_13, %c0_14, %c0_15] : memref<2x8x128xf32, #tpu.memory_space<vmem>>, vector<1x8x128xf32>
    %19 = vector.shape_cast %18 : vector<1x8x128xf32> to vector<8x128xf32>
    %20 = vector.shape_cast %17 : vector<8x128xf32> to vector<1x8x128xf32>
    tpu.vector_store %arg9[%c0_13, %c0_14, %c0_15], %20 {strides = array<i32>} : memref<2x8x128xf32, #tpu.memory_space<vmem>>, vector<1x8x128xf32>,
    %c1 = arith.constant 1 : index
    %c0_16 = arith.constant 0 : index
    %c0_17 = arith.constant 0 : index
    %21 = vector.load %arg4[%c1, %c0_16, %c0_17] : memref<2x4x128xf32, #tpu.memory_space<vmem>>, vector<1x4x128xf32>
    %22 = vector.shape_cast %21 : vector<1x4x128xf32> to vector<4x128xf32>
    %23 = vector.broadcast %4 : vector<4x1xf32> to vector<4x128xf32>
    %24 = arith.mulf %22, %23 : vector<4x128xf32>
    %25 = vector.broadcast %5 : vector<4x1xf32> to vector<4x128xf32>
    %26 = arith.addf %24, %25 : vector<4x128xf32>
    %cst_18 = arith.constant 0.000000e+00 : f32
    %27 = vector.broadcast %cst_18 : f32 to vector<4x128xf32>
    %28 = arith.maximumf %26, %27 : vector<4x128xf32>
    %c1_19 = arith.constant 1 : index
    %c0_20 = arith.constant 0 : index
    %c0_21 = arith.constant 0 : index
    %29 = vector.load %arg9[%c1_19, %c0_20, %c0_21] : memref<2x8x128xf32, #tpu.memory_space<vmem>>, vector<1x8x128xf32>
    %30 = vector.shape_cast %29 : vector<1x8x128xf32> to vector<8x128xf32>
    %cst_22 = arith.constant dense<0.000000e+00> : vector<8x128xf32>
    %31 = tpu.matmul %3, %28, %cst_22 {dimension_numbers = #tpu.dot_dimension_numbers<[1], [0], [0], [1], [0, 0, 1, 1], [], []>} : vector<8x4xf32>, vector<4x128xf32>, vector<8x128xf32> -> vector<8x128xf32>
    %32 = arith.addf %30, %31 : vector<8x128xf32>
    %c1_23 = arith.constant 1 : index
    %c0_24 = arith.constant 0 : index
    %c0_25 = arith.constant 0 : index
    %33 = vector.load %arg9[%c1_23, %c0_24, %c0_25] : memref<2x8x128xf32, #tpu.memory_space<vmem>>, vector<1x8x128xf32>
    %34 = vector.shape_cast %33 : vector<1x8x128xf32> to vector<8x128xf32>
    %35 = vector.shape_cast %32 : vector<8x128xf32> to vector<1x8x128xf32>
    tpu.vector_store %arg9[%c1_23, %c0_24, %c0_25], %35 {strides = array<i32>} : memref<2x8x128xf32, #tpu.memory_space<vmem>>, vector<1x8x128xf32>,
    %c0_i32_26 = arith.constant 0 : i32
    %36 = arith.cmpi eq, %arg3, %c0_i32_26 : i32
    %37 = arith.extui %36 : i1 to i32
    %c0_i32_27 = arith.constant 0 : i32
    %38 = arith.cmpi ne, %37, %c0_i32_27 : i32
    scf.if %38 {
      %c0_28 = arith.constant 0 : index
      %c0_29 = arith.constant 0 : index
      %c0_30 = arith.constant 0 : index
      %39 = vector.load %arg9[%c0_28, %c0_29, %c0_30] : memref<2x8x128xf32, #tpu.memory_space<vmem>>, vector<2x8x128xf32>
      %c0_31 = arith.constant 0 : index
      %c0_32 = arith.constant 0 : index
      %c0_33 = arith.constant 0 : index
      %40 = vector.load %arg8[%c0_31, %c0_32, %c0_33] : memref<2x8x128xf32, #tpu.memory_space<vmem>>, vector<2x8x128xf32>
      tpu.vector_store %arg8[%c0_31, %c0_32, %c0_33], %39 {strides = array<i32>} : memref<2x8x128xf32, #tpu.memory_space<vmem>>, vector<2x8x128xf32>,
    } else {
    }
    return
  }
  func.func @transform_0(%arg0: i32, %arg1: i32, %arg2: i32, %arg3: i32) -> (i32, i32, i32) {
    %c0_i32 = arith.constant 0 : i32
    return %arg0, %arg3, %arg2 : i32, i32, i32
  }
  func.func @transform_1(%arg0: i32, %arg1: i32, %arg2: i32, %arg3: i32) -> (i32, i32) {
    %c0_i32 = arith.constant 0 : i32
    %c0_i32_0 = arith.constant 0 : i32
    return %arg3, %c0_i32 : i32, i32
  }
  func.func @transform_2(%arg0: i32, %arg1: i32, %arg2: i32, %arg3: i32) -> (i32, i32) {
    %c0_i32 = arith.constant 0 : i32
    %c0_i32_0 = arith.constant 0 : i32
    return %arg3, %c0_i32 : i32, i32
  }
  func.func @transform_3(%arg0: i32, %arg1: i32, %arg2: i32, %arg3: i32) -> (i32, i32) {
    %c0_i32 = arith.constant 0 : i32
    return %arg1, %arg3 : i32, i32
  }
  func.func @transform_4(%arg0: i32, %arg1: i32, %arg2: i32, %arg3: i32) -> (i32, i32, i32) {
    %c0_i32 = arith.constant 0 : i32
    return %arg0, %arg1, %arg2 : i32, i32, i32
  }
}

</mosaic_0001>

<bundles_post_ra>
// kernel: tpu_custom_call.1
= control target key start
LH: loop header
LB: loop body
LE: loop exit
PB: predicated region body
PF: predicated region fallthrough
CT: control target
= control target key end

     0   :  { %9 = vsyncpa [#allocation5], 0  ;;  %s1035_s0 = inlined_call_operand.vmem [shape: f32[2,4,256], index: 0, kind: input, shape index: {}]   ;;  %s1036_s1 = inlined_call_operand.vmem [shape: f32[4,1], index: 1, kind: input, shape index: {}]   ;;  %s1037_s2 = inlined_call_operand.vmem [shape: f32[4,1], index: 2, kind: input, shape index: {}]   ;;  %s1038_s3 = inlined_call_operand.vmem [shape: f32[8,4], index: 3, kind: input, shape index: {}]   ;;  %s1039_s4 = inlined_call_operand.hbm [shape: f32[2,8,256], index: 4, kind: output, shape index: {}]  }
   0x1   :  { %11 = vsyncpa [#allocation5 + $0x1], 0  ;;  %s902_s15 = smov 0   ;;  %s904_s16 = smov 0  }
   0x2   :  { %s906_s17 = smov 0   ;;  %s908_s18 = smov 0  }
   0x3   :  { %s910_s19 = smov 0   ;;  %s912_s20 = smov 0  }
   0x4 LB: > { %s693_s21 = sadd.s32 4294967295, %s868_s20   ;;  %s694_s22 = sadd.s32 4294967294, %s868_s20   ;;  %s868_s20 = sphi %s912_s20, %s17_s20   ;;  %s864_s19 = sphi %s910_s19, %s1046_s19   ;;  %s860_s18 = sphi %s908_s18, %s1045_s18   ;;  %s856_s17 = sphi %s906_s17, %s1044_s17   ;;  %s852_s16 = sphi %s904_s16, %s1043_s16   ;;  %s848_s15 = sphi %s902_s15, %s1042_s15  }
   0x5   : > { %s35_s23 = sadd.s32 1, %s864_s19  ;;  %s54_s24 = sadd.s32 1, %s856_s17 }
   0x6   : > { %p37_p0 = scmp.ge.s32.totalorder %s35_s23, 2  ;;  %p61_p1 = scmp.ne.s32.totalorder %s856_s17, %s852_s16 }
   0x7   : > { %p62_p2 = scmp.eq.s32.totalorder %s868_s20, 0  ;;  %p175_p3 = scmp.eq.s32.totalorder %s693_s21, 1 }
   0x8   : > { %s1048_s23 = smov (%p37_p0, %s35_s23), 0  ;;  %p180_p6 = scmp.ne.s32.totalorder %s852_s16, %s848_s15 }
   0x9   : > { %p63_p4 = por %p62_p2, %p61_p1  ;;  %p941_p5 = por %p175_p3, %p61_p1 }
   0xa   : > { %s50_s26 = ssub.s32 %s864_s19, %s1048_s23  ;;  %p181_p8 = scmp.eq.s32.totalorder %s694_s22, 1 }
   0xb   : > { %p52_p7 = scmp.eq.s32.totalorder %s50_s26, 0  ;;  %p699_p10 = scmp.ge.s32.totalorder %s868_s20, 2 }
   0xc   : > { %p952_p9 = por %p181_p8, %p180_p6 }
   0xd   : > { %s950_s27 = scalar_select %p52_p7, %s856_s17, %s54_s24  }
   0xe   : > { %221 = sbr.rel (%p699_p10) target bundleno = 28 (0x1c), region = 28 }
  0x15   : > { %224 = sbr.rel (!%p63_p4) target bundleno = 28 (0x1c), region = 32  ;;  %s226_s29 = sand.u32 (%p63_p4), 1, %s856_s17  }
  0x16   : > { %s701_s30 = sshll.u32 (%p63_p4), %s864_s19, 2  ;;  %s700_s5 = sshll.u32 (%p63_p4), %s226_s29, 3 }
  0x17   : > { %s235_s8 = scalar_lea.vmem (%p63_p4), %s1035_s0, %s701_s30  ;;  %s228_s9 = scalar_lea.vmem (%p63_p4), [#allocation3], %s700_s5 }
  0x18   : > { %v251_v0 = vld [vmem:[%s235_s8] sm:$0xf] (%p63_p4)  ;;  %v253_v1 = vld [vmem:[%s235_s8 + $0x8] sm:$0xf] (%p63_p4) }
  0x19   : > { %252 = vst [vmem:[%s228_s9] sm:$0xf] (%p63_p4), %v251_v0  ;;  %254 = vst [vmem:[%s228_s9 + $0x4] sm:$0xf] (%p63_p4), %v253_v1 }
  0x1c PF: > { %p702_p11 = scmp.ge.s32.totalorder %s868_s20, 1  ;;  %p280_p12 = scmp.lt.s32.totalorder %s868_s20, 3 }
  0x1e   : > { %p281_p13 = pnand %p702_p11, %p280_p12 }
  0x1f   : > { %v351_v2 = vld [vmem:[%s1036_s1] sm:$0xf] (!%p281_p13)  ;;  %v870_v3 = vmov (!%p281_p13), 0   ;;  %v871_v5 = vmov (!%p281_p13), 0.0   ;;  %vm872_vm0 = vmmov (!%p281_p13), 0   ;;  %s973_s14 = sand.u32 (!%p281_p13), 1, %s852_s16  }
  0x20   : > { %284 = sbr.rel (%p281_p13) target bundleno = 398 (0x18e), region = 73  ;;  %789 = vset.pattern.permute.xlu0 (!%p281_p13), %v870_v3  ;;  %v352_v4 = vld [vmem:[%s1037_s2] sm:$0xf] (!%p281_p13)  ;;  %718 = vmatprep.subr.mxu0 (!%p281_p13), %v871_v5  ;;  %s703_s21 = sshll.u32 (!%p281_p13), %s973_s14, 3  ;;  %vm372_vm1 = vcmask (!%p281_p13), 1043456   ;;  %vm368_vm2 = vcmask (!%p281_p13), 31744  }
  0x21   : > { %356 = vperm.xlu0 (!%p281_p13), %789, %v351_v2   ;;  %723 = vmatprep.subr.mxu1 (!%p281_p13), %v871_v5  ;;  %s289_s22 = scalar_lea.vmem (!%p281_p13), [#allocation3], %s703_s21  ;;  %v350_v16 = vld [vmem:[%s1038_s3] sm:$0xff] (!%p281_p13)  ;;  %s704_s29 = sshll.u32 (!%p281_p13), %s973_s14, 4 }
  0x22   : > { %720 = vmatprep.mubr.msk.f32.mxu0 (!%p281_p13), %vm872_vm0, %v871_v5  ;;  %725 = vmatprep.mubr.msk.f32.mxu1 (!%p281_p13), %vm872_vm0, %v871_v5  ;;  %v353_v7 = vld [vmem:[%s289_s22] sm:$0xf] (!%p281_p13)  ;;  %v707_v8 = vld [vmem:[%s289_s22 + $0x4] sm:$0xf] (!%p281_p13)  ;;  %s326_s30 = scalar_lea.vmem (!%p281_p13), [#allocation4], %s704_s29  ;;  %s711_s6 = sshll.u32 (!%p281_p13), %s860_s18, 7 }
  0x23   : > { %s555_s5 = sshll.u32 (!%p281_p13), %s326_s30, 4  ;;  %s986_s9 = scalar_lea.hbm (!%p281_p13), %s1039_s4, %s711_s6  ;;  %s981_s5 = int_to_ptr.vmem [resolvable:$true] %s555_s5 }
  0x24   : > { %s538_s10 = scalar_lea.sflag (!%p281_p13), [#allocation5], %s973_s14  ;;  %s790_s11 = scalar_lea.vmem (!%p281_p13), %s981_s5, 256 }
  0x25   : > { %362 = vperm.xlu0 (!%p281_p13), %789, %v352_v4   ;;  %p791_p0 = scmp.ne.s32.totalorder (!%p281_p13), %s981_s5, %s790_s11  ;;  %s873_s18 = smov (!%p281_p13), [#allocation4]  }
  0x26   : > { %s794_s12 = sshll.u32 (!%p281_p13), %s873_s18, 4  ;;  %s795_s12 = int_to_ptr.vmem [resolvable:$false] %s794_s12 }
  0x27   : > { %p792_p1 = pnand %p791_p0, %p941_p5  ;;  %s796_s13 = scalar_lea.vmem %s795_s12, 512 }
  0x28   : > { %p797_p3 = scmp.lt.s32.totalorder %s981_s5, %s795_s12  ;;  %p798_p4 = scmp.lt.s32.totalorder %s796_s13, %s790_s11 }
  0x29   : > { %p793_p2 = pneg %p792_p1 }
  0x2a   : > { %p799_p6 = por %p798_p4, %p797_p3 }
  0x2c   : > { %p800_p7 = pnand %p799_p6, %p793_p2 }
  0xa0   : > { %v357_v6 = vpop.permute.xlu0 %356 }
  0xa1   : > { %v359_v9 = vmul.f32 %v357_v6, %v353_v7  ;;  %v450_v10 = vmul.f32 %v707_v8, %v357_v6 }
  0xa4   : > { %v363_v11 = vpop.permute.xlu0 %362 }
  0xa5   : > { %v365_v12 = vadd.f32 %v363_v11, %v359_v9  ;;  %v451_v13 = vadd.f32 %v450_v10, %v363_v11 }
  0xa7   : > { %v366_v14 = vmax.f32 %v365_v12, 0.0  ;;  %v452_v15 = vmax.f32 %v451_v13, 0.0 }
  0xa9   : > { %719 = vmatpush3.msk.msra.mxu0 %vm372_vm1, %v366_v14  ;;  %724 = vmatpush3.msk.msra.mxu1 %vm372_vm1, %v452_v15 }
  0xaa   : > { %721 = vmatmul.mubr.msk.f32.vlgmr.msra.gmra.mrb[0].mxu0 %vm368_vm2, %v350_v16  ;;  %726 = vmatmul.mubr.msk.f32.vlgmr.msra.gmra.mrb[0].mxu1 %vm368_vm2, %v350_v16 }
 0x17d   : > { %v442_v17 = vpop.f32.mrb[0].mxu0  ;;  %v524_v18 = vpop.f32.mrb[0].mxu1 }
 0x17e   : > { %535 = vst [vmem:[%s326_s30] sm:$0xff] %v442_v17  ;;  %536 = vst [vmem:[%s326_s30 + $0x8] sm:$0xff] %v524_v18  ;;  %v722_v19 = vpop.f32.mrb[1].mxu0  ;;  %v727_v20 = vpop.f32.mrb[1].mxu1 }
 0x17f   : > { %803 = shalt.err (!%p800_p7)
}
 0x180   : > { %s804_s21 = scalar_lea.hbm %s986_s9, 256  ;;  %s808_s26 = scalar_lea.hbm %s1039_s4, 512 }
 0x181   : > { %p805_p8 = scmp.ne.s32.totalorder %s986_s9, %s804_s21  ;;  %p809_p13 = scmp.lt.u32.totalorder %s986_s9, %s1039_s4 }
 0x182   : > { %p810_p0 = scmp.lt.u32.totalorder %s808_s26, %s804_s21  ;;  %p812_p2 = scmp.lt.u32.totalorder %s804_s21, %s986_s9 }
 0x183   : > { %p806_p11 = pnand %p805_p8, %p941_p5 }
 0x184   : > { %p811_p1 = por %p810_p0, %p809_p13 }
 0x185   : > { %p807_p12 = pneg %p806_p11 }
 0x186   : > { %p813_p3 = por %p812_p2, %p811_p1 }
 0x188   : > { %p814_p4 = pnand %p813_p3, %p807_p12 }
 0x18a   : > { %817 = shalt.err (!%p814_p4)
}
 0x18b   : > { %s874_s6 = smov 128   ;;  %s875_s7 = smov 256  }
 0x18c   : > { %s876_s8 = smov 8  }
 0x18d   : > { %728 = dma.vmem_to_hbm [thread:$0]  (%p941_p5), %s981_s5, 256, %s986_s9, %s538_s10, %s874_s6, %s875_s7, %s876_s8  }
 0x18e PF: > { %s570_s11 = sand.u32 1, %s848_s15   ;;  %p731_p6 = pnand %p699_p10, %p952_p9 }
 0x18f   : > { %s571_s18 = scalar_lea.sflag [#allocation5], %s570_s11 }
 0x190   : > { %843 = dma.done.wait (!%p731_p6), %s571_s18, 256  }
 0x191   : > { %845 = vsyncadd (!%p731_p6), %s571_s18, 4294967040  ;;  %s17_s20 = sadd.s32 1, %s868_s20   ;;  %s1042_s15 = smov %s852_s16 }
 0x192   : > { %p14_p7 = scmp.ge.s32.totalorder %s17_s20, 4   ;;  %s1043_s16 = smov %s856_s17 }
 0x193   : > { %s1044_s17 = smov %s950_s27  ;;  %s1045_s18 = smov %s864_s19 }
 0x194   : > { %s1046_s19 = smov %s1048_s23  ;;  %16 = sbr.rel (!%p14_p7) target bundleno = 4 (0x4), region = 136 }
 0x19b   :  { %576 = vsyncpa [#allocation5], 1 }
 0x19c   :  { %578 = vsyncpa [#allocation5 + $0x1], 1 }

</bundles_post_ra>
